<compile_context>
chip_gen: v5e
topology: v5e:2x2
jax: 0.10.0
libtpu: 0.0.40
codegen_flags: <defaults>
</compile_context>

<pallas_src>
import math
import functools

import jax
import jax.numpy as jnp
from jax.experimental import pallas as pl
from jax.experimental.pallas import tpu as pltpu


# --------------------------------------------------------------------------- #
# Stage 1: fused QKV projection with head-split output layout                  #
# --------------------------------------------------------------------------- #
def _qkv_proj_kernel(xq_ref, xk_ref, xv_ref,
                     wq_ref, wk_ref, wv_ref,
                     bq_ref, bk_ref, bv_ref,
                     qh_ref, kh_ref, vh_ref, *, mxu_dtype):
    # x*_ref: (ts, H);  w*_ref: (heads, H, d);  b*_ref: (heads, 1, d)
    # out *_ref: (heads, ts, d)  -> output array is (B, heads, S, d): no XLA
    # transpose between the stages.
    def proj(x_ref, w_ref, b_ref, o_ref):
        x = x_ref[...].astype(mxu_dtype)
        w = w_ref[...].astype(mxu_dtype)
        y = jnp.einsum("sh,nhd->nsd", x, w,
                       preferred_element_type=jnp.float32)   # (heads, ts, d), f32
        o_ref[...] = (y + b_ref[...]).astype(o_ref.dtype)

    proj(xq_ref, wq_ref, bq_ref, qh_ref)
    proj(xk_ref, wk_ref, bk_ref, kh_ref)
    proj(xv_ref, wv_ref, bv_ref, vh_ref)


# --------------------------------------------------------------------------- #
# Stage 2: flash attention with fused output projection                        #
# --------------------------------------------------------------------------- #
def _flash_mha_kernel(q_ref, k_ref, v_ref, wo_ref, bo_ref, out_ref,
                      m_sc, l_sc, acc_sc, *, mxu_dtype):
    ki = pl.program_id(2)

    @pl.when(ki == 0)
    def _init():
        m_sc[...] = jnp.full(m_sc.shape, -jnp.inf, dtype=m_sc.dtype)
        l_sc[...] = jnp.zeros(l_sc.shape, dtype=l_sc.dtype)
        acc_sc[...] = jnp.zeros(acc_sc.shape, dtype=acc_sc.dtype)

    q = q_ref[...].astype(mxu_dtype)          # (heads, tq, d) -- already scaled
    k = k_ref[...].astype(mxu_dtype)          # (heads, tk, d)
    v = v_ref[...].astype(mxu_dtype)          # (heads, tk, d)

    # Scores: batched over heads, contracting head_dim directly.  The 1/sqrt(d)
    # scale was folded into the q projection weights (zero runtime cost).
    s = jnp.einsum("hqd,hkd->hqk", q, k,
                   preferred_element_type=jnp.float32)        # (heads, tq, tk)
    # TODO(synk): mask (default None in the reference forward) not implemented.

    # Online softmax -- all statistics kept in f32 (valid on v5e as well).
    m_prev = m_sc[...]                                        # (heads, tq, 1)
    m_new = jnp.maximum(m_prev, jnp.max(s, axis=-1, keepdims=True))
    alpha = jnp.exp(m_prev - m_new)
    p = jnp.exp(s - m_new)                                    # (heads, tq, tk) f32
    # TODO(synk): dropout on attention probabilities treated as identity (eval).
    l_sc[...] = alpha * l_sc[...] + jnp.sum(p, axis=-1, keepdims=True)
    acc_sc[...] = alpha * acc_sc[...] + jnp.einsum(
        "hqk,hkd->hqd", p.astype(mxu_dtype), v,
        preferred_element_type=jnp.float32)                   # (heads, tq, d)
    m_sc[...] = m_new

    @pl.when(ki == pl.num_programs(2) - 1)
    def _finalize():
        # Exact reciprocal: runs once per q tile, so it costs essentially
        # nothing and avoids the accuracy loss of the approximate EUP rcp.
        attn = acc_sc[...] / l_sc[...]                        # (heads, tq, d) f32
        heads, tq, d = attn.shape
        # Single (tq, heads*d) x (H, H) MXU contraction -- no (heads, tq, H)
        # temporary and no cross-head reduction.
        ctx = jnp.swapaxes(attn, 0, 1).reshape(tq, heads * d)  # (tq, H)
        out = jnp.dot(ctx.astype(mxu_dtype), wo_ref[...],
                      preferred_element_type=jnp.float32) + bo_ref[...]
        out_ref[...] = out.astype(out_ref.dtype)               # lane-dense (tq, H)


# --------------------------------------------------------------------------- #
# Tiling / VMEM helpers                                                        #
# --------------------------------------------------------------------------- #
def _pick_tile(n, target):
    """Largest power-of-two tile <= target that divides n (falls back to n)."""
    if n <= target:
        return n
    t = target
    while t >= 8:
        if n % t == 0:
            return t
        t //= 2
    return n


def _vmem_cap_bytes():
    """~75% of the chip's VMEM if queryable (64 MiB on v7x, 128 MiB on v5e/v6e),
    otherwise a conservative 48 MiB that every generation can grant."""
    try:
        info = pltpu.get_tpu_info()
        cap = getattr(info, "vmem_capacity_bytes", None) or (128 << 20)
        return int(min(0.75 * cap, 100 << 20))
    except Exception:
        return 48 << 20


def _clamp_limit(est_bytes, cap):
    return int(min(cap, max(32 << 20, int(1.3 * est_bytes))))


# --------------------------------------------------------------------------- #
# Wrapper                                                                      #
# --------------------------------------------------------------------------- #
def multi_headed_attention(q, k, v, params, *, num_heads,
                           mxu_dtype=jnp.bfloat16):
    """q, k, v: (B, S, H).  params: dict of (H,H) weights / (1,H) biases.

    mxu_dtype is the MXU operand dtype (bf16 default = fast path on all
    generations; accumulation, softmax statistics and bias adds stay f32).
    Use mxu_dtype=jnp.float32 for strict numerical checks.
    """
    B, S, H = q.shape
    assert H % num_heads == 0
    d = H // num_heads
    scale = 1.0 / math.sqrt(d)

    cap = _vmem_cap_bytes()
    in_bytes = jnp.dtype(mxu_dtype).itemsize
    inter_dtype = mxu_dtype   # inter-stage activations stored at MXU precision

    # Decoupled tiles: small q tile, chunky kv tile (larger target when VMEM is
    # plentiful, i.e. v5e/v6e).
    ts = _pick_tile(S, 256)
    tq = _pick_tile(S, 128)
    tk = _pick_tile(S, 512 if cap >= (96 << 20) else 256)
    # v7x has 2 TensorCores sharding the parallel axes: with B == 1 make sure
    # the parallel q-tile axis exposes at least 2 work units.
    if B == 1 and tq == S and S % 16 == 0:
        tq = S // 2
    assert S % ts == 0 and S % tq == 0 and S % tk == 0

    # ------------- weight preparation (tiny, done once outside) ------------- #
    f32 = jnp.float32

    def per_head(w):                    # (H, H) -> (heads, H, d)
        return w.reshape(H, num_heads, d).transpose(1, 0, 2)

    wq_r = per_head(params["wq"].astype(f32) * scale).astype(mxu_dtype)
    wk_r = per_head(params["wk"]).astype(mxu_dtype)
    wv_r = per_head(params["wv"]).astype(mxu_dtype)
    bq_r = (params["bq"].astype(f32) * scale).reshape(num_heads, 1, d)
    bk_r = params["bk"].astype(f32).reshape(num_heads, 1, d)
    bv_r = params["bv"].astype(f32).reshape(num_heads, 1, d)
    wo_c = params["wo"].astype(mxu_dtype)          # (H, H), MXU dtype halves footprint
    bo = params["bo"].astype(f32)                  # (1, H)

    # ---------------- Stage 1: QKV projection (head-split output) ---------------- #
    est1 = (2 * 3 * ts * H * 4                     # x blocks (double-buffered)
            + 2 * 3 * num_heads * H * d * in_bytes  # weights
            + 2 * 3 * num_heads * d * 4             # biases
            + 2 * 3 * num_heads * ts * d * in_bytes  # outputs
            + 3 * num_heads * ts * d * 4)            # f32 dot temporaries
    vmem1 = _clamp_limit(est1, cap)

    x_spec = pl.BlockSpec((None, ts, H), lambda b, s: (b, s, 0))
    w_spec = pl.BlockSpec((num_heads, H, d), lambda b, s: (0, 0, 0))
    b_spec = pl.BlockSpec((num_heads, 1, d), lambda b, s: (0, 0, 0))
    hd_out = pl.BlockSpec((None, num_heads, ts, d), lambda b, s: (b, 0, s, 0))
    # NOTE(v7x, large H): the output-feature dim could additionally be tiled by
    # adding a head-group grid axis; unnecessary at these weight sizes.

    qh, kh, vh = pl.pallas_call(
        functools.partial(_qkv_proj_kernel, mxu_dtype=mxu_dtype),
        out_shape=[jax.ShapeDtypeStruct((B, num_heads, S, d), inter_dtype)] * 3,
        grid_spec=pltpu.PrefetchScalarGridSpec(
            num_scalar_prefetch=0,
            grid=(B, S // ts),
            in_specs=[x_spec, x_spec, x_spec,
                      w_spec, w_spec, w_spec,
                      b_spec, b_spec, b_spec],
            out_specs=[hd_out, hd_out, hd_out],
        ),
        compiler_params=pltpu.CompilerParams(
            dimension_semantics=("parallel", "parallel"),
            vmem_limit_bytes=vmem1),
    )(q, k, v, wq_r, wk_r, wv_r, bq_r, bk_r, bv_r)

    # ---------------- Stage 2: flash attention + fused output projection ---------------- #
    est2 = (2 * num_heads * tq * d * in_bytes       # q block
            + 2 * 2 * num_heads * tk * d * in_bytes  # k, v blocks
            + 2 * (H * H + H) * in_bytes             # wo, bo (grid-constant)
            + 2 * tq * H * 4                         # output block
            + num_heads * tq * (d + 2) * 4           # scratch m, l, acc
            + 2 * num_heads * tq * tk * 4            # s and p temporaries
            + 2 * tq * H * 4)                        # ctx / out temporaries
    vmem2 = _clamp_limit(est2, cap)

    # NOTE(v7x, large H): wo/bo are grid-constant; single-buffering them
    # (pipeline_mode=pl.Buffered(1)) reclaims half their VMEM footprint.
    out = pl.pallas_call(
        functools.partial(_flash_mha_kernel, mxu_dtype=mxu_dtype),
        out_shape=jax.ShapeDtypeStruct((B, S, H), q.dtype),
        grid_spec=pltpu.PrefetchScalarGridSpec(
            num_scalar_prefetch=0,
            grid=(B, S // tq, S // tk),
            in_specs=[
                pl.BlockSpec((None, num_heads, tq, d),
                             lambda b, qi, ki: (b, 0, qi, 0)),
                pl.BlockSpec((None, num_heads, tk, d),
                             lambda b, qi, ki: (b, 0, ki, 0)),
                pl.BlockSpec((None, num_heads, tk, d),
                             lambda b, qi, ki: (b, 0, ki, 0)),
                pl.BlockSpec((H, H), lambda b, qi, ki: (0, 0)),
                pl.BlockSpec((1, H), lambda b, qi, ki: (0, 0)),
            ],
            out_specs=pl.BlockSpec((None, tq, H), lambda b, qi, ki: (b, qi, 0)),
            scratch_shapes=[
                pltpu.VMEM((num_heads, tq, 1), jnp.float32),   # running max m
                pltpu.VMEM((num_heads, tq, 1), jnp.float32),   # running sum l
                pltpu.VMEM((num_heads, tq, d), jnp.float32),   # running acc
            ],
        ),
        compiler_params=pltpu.CompilerParams(
            dimension_semantics=("parallel", "parallel", "arbitrary"),
            vmem_limit_bytes=vmem2),
    )(qh, kh, vh, wo_c, bo)

    return out


# --------------------------------------------------------------------------- #
# Parameters & pure-JAX reference                                              #
# --------------------------------------------------------------------------- #
def init_params(key, hidden_size):
    """Deterministic synthetic parameters (shapes match the torch module,
    weights stored pre-transposed as (H_in, H_out))."""
    ks = jax.random.split(key, 8)
    H = hidden_size
    lin_scale = 1.0 / math.sqrt(H)          # ~ nn.Linear default scale
    xavier_std = math.sqrt(2.0 / (H + H))   # xavier_normal_ for w_layer
    return {
        "wq": jax.random.uniform(ks[0], (H, H), jnp.float32, -lin_scale, lin_scale),
        "bq": jax.random.uniform(ks[1], (1, H), jnp.float32, -lin_scale, lin_scale),
        "wk": jax.random.uniform(ks[2], (H, H), jnp.float32, -lin_scale, lin_scale),
        "bk": jax.random.uniform(ks[3], (1, H), jnp.float32, -lin_scale, lin_scale),
        "wv": jax.random.uniform(ks[4], (H, H), jnp.float32, -lin_scale, lin_scale),
        "bv": jax.random.uniform(ks[5], (1, H), jnp.float32, -lin_scale, lin_scale),
        "wo": xavier_std * jax.random.normal(ks[6], (H, H), jnp.float32),
        "bo": jax.random.uniform(ks[7], (1, H), jnp.float32, -lin_scale, lin_scale),
    }


def _reference(q, k, v, params, *, num_heads):
    """Pure-JAX reference mirroring the torch forward (mask=None, eval dropout),
    computed at highest precision."""
    B, S, H = q.shape
    d = H // num_heads
    hp = jax.lax.Precision.HIGHEST

    def proj(x, w, b):
        return jnp.einsum("bsh,ho->bso", x, w, precision=hp) + b

    def split(x):
        return x.reshape(B, S, num_heads, d).transpose(0, 2, 1, 3)

    qp = split(proj(q, params["wq"], params["bq"]))
    kp = split(proj(k, params["wk"], params["bk"]))
    vp = split(proj(v, params["wv"], params["bv"]))

    corr = jnp.einsum("bhqd,bhkd->bhqk", qp, kp, precision=hp) / math.sqrt(d)
    prob = jax.nn.softmax(corr, axis=-1)
    hidden = jnp.einsum("bhqk,bhkd->bhqd", prob, vp, precision=hp)
    hidden = hidden.transpose(0, 2, 1, 3).reshape(B, S, H)
    return jnp.einsum("bsh,ho->bso", hidden, params["wo"], precision=hp) + params["bo"]


if __name__ == "__main__":
    B, S, H, HEADS = 2, 8, 32, 4

    key = jax.random.PRNGKey(0)
    kq, kk, kv, kp = jax.random.split(key, 4)
    q = jax.random.normal(kq, (B, S, H), jnp.float32)
    k = jax.random.normal(kk, (B, S, H), jnp.float32)
    v = jax.random.normal(kv, (B, S, H), jnp.float32)
    params = init_params(kp, H)

    ref = _reference(q, k, v, params, num_heads=HEADS)

    # Strict numerical validation with f32 MXU operands (exact reciprocal,
    # f32 everywhere): must match the reference tightly.
    out_f32 = multi_headed_attention(q, k, v, params, num_heads=HEADS,
                                     mxu_dtype=jnp.float32)
    out_f32 = jax.block_until_ready(out_f32)
    assert out_f32.shape == (B, S, H)
    assert jnp.allclose(out_f32, ref, atol=5e-3, rtol=5e-3), "f32 mismatch vs reference"

    # Default fast path: bf16 MXU operands, f32 accumulation / softmax stats.
    out = multi_headed_attention(q, k, v, params, num_heads=HEADS)
    out = jax.block_until_ready(out)
    assert out.shape == (B, S, H)
    assert jnp.allclose(out.astype(jnp.float32), ref, atol=8e-2, rtol=8e-2), \
        "bf16 mismatch vs reference"

    print("KERNEL_OK")
</pallas_src>

<mosaic_0001>
module attributes {stable_mosaic.version = 11 : i64} {
  func.func @_qkv_proj_kernel(%arg0: i32, %arg1: i32, %arg2: memref<1x8x32xf32, #tpu.memory_space<vmem>>, %arg3: memref<1x8x32xf32, #tpu.memory_space<vmem>>, %arg4: memref<1x8x32xf32, #tpu.memory_space<vmem>>, %arg5: memref<4x32x8xf32, #tpu.memory_space<vmem>>, %arg6: memref<4x32x8xf32, #tpu.memory_space<vmem>>, %arg7: memref<4x32x8xf32, #tpu.memory_space<vmem>>, %arg8: memref<4x1x8xf32, #tpu.memory_space<vmem>>, %arg9: memref<4x1x8xf32, #tpu.memory_space<vmem>>, %arg10: memref<4x1x8xf32, #tpu.memory_space<vmem>>, %arg11: memref<1x4x8x8xf32, #tpu.memory_space<vmem>>, %arg12: memref<1x4x8x8xf32, #tpu.memory_space<vmem>>, %arg13: memref<1x4x8x8xf32, #tpu.memory_space<vmem>>) attributes {dimension_semantics = [#tpu.dimension_semantics<parallel>, #tpu.dimension_semantics<parallel>], iteration_bounds = array<i64: 2, 1>, scalar_prefetch = 0 : i64, scratch_operands = 0 : i64, tpu.core_type = #tpu.core_type<tc>, window_params = [{transform_indices = @transform_0, window_bounds = array<i64: 1, 8, 32>}, {transform_indices = @transform_1, window_bounds = array<i64: 1, 8, 32>}, {transform_indices = @transform_2, window_bounds = array<i64: 1, 8, 32>}, {pipeline_mode = #tpu.pipeline_mode<synchronous>, transform_indices = @transform_3, window_bounds = array<i64: 4, 32, 8>}, {pipeline_mode = #tpu.pipeline_mode<synchronous>, transform_indices = @transform_4, window_bounds = array<i64: 4, 32, 8>}, {pipeline_mode = #tpu.pipeline_mode<synchronous>, transform_indices = @transform_5, window_bounds = array<i64: 4, 32, 8>}, {pipeline_mode = #tpu.pipeline_mode<synchronous>, transform_indices = @transform_6, window_bounds = array<i64: 4, 1, 8>}, {pipeline_mode = #tpu.pipeline_mode<synchronous>, transform_indices = @transform_7, window_bounds = array<i64: 4, 1, 8>}, {pipeline_mode = #tpu.pipeline_mode<synchronous>, transform_indices = @transform_8, window_bounds = array<i64: 4, 1, 8>}, {transform_indices = @transform_9, window_bounds = array<i64: 1, 4, 8, 8>}, {transform_indices = @transform_10, window_bounds = array<i64: 1, 4, 8, 8>}, {transform_indices = @transform_11, window_bounds = array<i64: 1, 4, 8, 8>}]} {
    %c0 = arith.constant 0 : index
    %c0_0 = arith.constant 0 : index
    %c0_1 = arith.constant 0 : index
    %0 = vector.load %arg2[%c0, %c0_0, %c0_1] : memref<1x8x32xf32, #tpu.memory_space<vmem>>, vector<1x8x32xf32>
    %1 = vector.shape_cast %0 : vector<1x8x32xf32> to vector<8x32xf32>
    %c0_2 = arith.constant 0 : index
    %c0_3 = arith.constant 0 : index
    %c0_4 = arith.constant 0 : index
    %2 = vector.load %arg5[%c0_2, %c0_3, %c0_4] : memref<4x32x8xf32, #tpu.memory_space<vmem>>, vector<4x32x8xf32>
    "tpu.trace_start"() <{level = 10 : i32, message = "sh,nhd->nsd"}> : () -> ()
    %cst = arith.constant dense<0.000000e+00> : vector<4x8x8xf32>
    %3 = tpu.matmul %2, %1, %cst {dimension_numbers = #tpu.dot_dimension_numbers<[1], [1], [0, 2], [0], [0, 0, 0, 2, 1, 0], [], []>} : vector<4x32x8xf32>, vector<8x32xf32>, vector<4x8x8xf32> -> vector<4x8x8xf32>
    %4 = tpu.transpose %3, [0, 2, 1] : vector<4x8x8xf32> -> vector<4x8x8xf32>
    "tpu.trace_stop"() : () -> ()
    %c0_5 = arith.constant 0 : index
    %c0_6 = arith.constant 0 : index
    %c0_7 = arith.constant 0 : index
    %5 = vector.load %arg8[%c0_5, %c0_6, %c0_7] : memref<4x1x8xf32, #tpu.memory_space<vmem>>, vector<4x1x8xf32>
    %6 = vector.broadcast %5 : vector<4x1x8xf32> to vector<4x8x8xf32>
    %7 = arith.addf %4, %6 : vector<4x8x8xf32>
    %c0_8 = arith.constant 0 : index
    %c0_9 = arith.constant 0 : index
    %c0_10 = arith.constant 0 : index
    %c0_11 = arith.constant 0 : index
    %8 = vector.load %arg11[%c0_8, %c0_9, %c0_10, %c0_11] : memref<1x4x8x8xf32, #tpu.memory_space<vmem>>, vector<1x4x8x8xf32>
    %9 = vector.shape_cast %8 : vector<1x4x8x8xf32> to vector<4x8x8xf32>
    %10 = vector.shape_cast %7 : vector<4x8x8xf32> to vector<1x4x8x8xf32>
    tpu.vector_store %arg11[%c0_8, %c0_9, %c0_10, %c0_11], %10 {strides = array<i32>} : memref<1x4x8x8xf32, #tpu.memory_space<vmem>>, vector<1x4x8x8xf32>,
    %c0_12 = arith.constant 0 : index
    %c0_13 = arith.constant 0 : index
    %c0_14 = arith.constant 0 : index
    %11 = vector.load %arg3[%c0_12, %c0_13, %c0_14] : memref<1x8x32xf32, #tpu.memory_space<vmem>>, vector<1x8x32xf32>
    %12 = vector.shape_cast %11 : vector<1x8x32xf32> to vector<8x32xf32>
    %c0_15 = arith.constant 0 : index
    %c0_16 = arith.constant 0 : index
    %c0_17 = arith.constant 0 : index
    %13 = vector.load %arg6[%c0_15, %c0_16, %c0_17] : memref<4x32x8xf32, #tpu.memory_space<vmem>>, vector<4x32x8xf32>
    "tpu.trace_start"() <{level = 10 : i32, message = "sh,nhd->nsd"}> : () -> ()
    %cst_18 = arith.constant dense<0.000000e+00> : vector<4x8x8xf32>
    %14 = tpu.matmul %13, %12, %cst_18 {dimension_numbers = #tpu.dot_dimension_numbers<[1], [1], [0, 2], [0], [0, 0, 0, 2, 1, 0], [], []>} : vector<4x32x8xf32>, vector<8x32xf32>, vector<4x8x8xf32> -> vector<4x8x8xf32>
    %15 = tpu.transpose %14, [0, 2, 1] : vector<4x8x8xf32> -> vector<4x8x8xf32>
    "tpu.trace_stop"() : () -> ()
    %c0_19 = arith.constant 0 : index
    %c0_20 = arith.constant 0 : index
    %c0_21 = arith.constant 0 : index
    %16 = vector.load %arg9[%c0_19, %c0_20, %c0_21] : memref<4x1x8xf32, #tpu.memory_space<vmem>>, vector<4x1x8xf32>
    %17 = vector.broadcast %16 : vector<4x1x8xf32> to vector<4x8x8xf32>
    %18 = arith.addf %15, %17 : vector<4x8x8xf32>
    %c0_22 = arith.constant 0 : index
    %c0_23 = arith.constant 0 : index
    %c0_24 = arith.constant 0 : index
    %c0_25 = arith.constant 0 : index
    %19 = vector.load %arg12[%c0_22, %c0_23, %c0_24, %c0_25] : memref<1x4x8x8xf32, #tpu.memory_space<vmem>>, vector<1x4x8x8xf32>
    %20 = vector.shape_cast %19 : vector<1x4x8x8xf32> to vector<4x8x8xf32>
    %21 = vector.shape_cast %18 : vector<4x8x8xf32> to vector<1x4x8x8xf32>
    tpu.vector_store %arg12[%c0_22, %c0_23, %c0_24, %c0_25], %21 {strides = array<i32>} : memref<1x4x8x8xf32, #tpu.memory_space<vmem>>, vector<1x4x8x8xf32>,
    %c0_26 = arith.constant 0 : index
    %c0_27 = arith.constant 0 : index
    %c0_28 = arith.constant 0 : index
    %22 = vector.load %arg4[%c0_26, %c0_27, %c0_28] : memref<1x8x32xf32, #tpu.memory_space<vmem>>, vector<1x8x32xf32>
    %23 = vector.shape_cast %22 : vector<1x8x32xf32> to vector<8x32xf32>
    %c0_29 = arith.constant 0 : index
    %c0_30 = arith.constant 0 : index
    %c0_31 = arith.constant 0 : index
    %24 = vector.load %arg7[%c0_29, %c0_30, %c0_31] : memref<4x32x8xf32, #tpu.memory_space<vmem>>, vector<4x32x8xf32>
    "tpu.trace_start"() <{level = 10 : i32, message = "sh,nhd->nsd"}> : () -> ()
    %cst_32 = arith.constant dense<0.000000e+00> : vector<4x8x8xf32>
    %25 = tpu.matmul %24, %23, %cst_32 {dimension_numbers = #tpu.dot_dimension_numbers<[1], [1], [0, 2], [0], [0, 0, 0, 2, 1, 0], [], []>} : vector<4x32x8xf32>, vector<8x32xf32>, vector<4x8x8xf32> -> vector<4x8x8xf32>
    %26 = tpu.transpose %25, [0, 2, 1] : vector<4x8x8xf32> -> vector<4x8x8xf32>
    "tpu.trace_stop"() : () -> ()
    %c0_33 = arith.constant 0 : index
    %c0_34 = arith.constant 0 : index
    %c0_35 = arith.constant 0 : index
    %27 = vector.load %arg10[%c0_33, %c0_34, %c0_35] : memref<4x1x8xf32, #tpu.memory_space<vmem>>, vector<4x1x8xf32>
    %28 = vector.broadcast %27 : vector<4x1x8xf32> to vector<4x8x8xf32>
    %29 = arith.addf %26, %28 : vector<4x8x8xf32>
    %c0_36 = arith.constant 0 : index
    %c0_37 = arith.constant 0 : index
    %c0_38 = arith.constant 0 : index
    %c0_39 = arith.constant 0 : index
    %30 = vector.load %arg13[%c0_36, %c0_37, %c0_38, %c0_39] : memref<1x4x8x8xf32, #tpu.memory_space<vmem>>, vector<1x4x8x8xf32>
    %31 = vector.shape_cast %30 : vector<1x4x8x8xf32> to vector<4x8x8xf32>
    %32 = vector.shape_cast %29 : vector<4x8x8xf32> to vector<1x4x8x8xf32>
    tpu.vector_store %arg13[%c0_36, %c0_37, %c0_38, %c0_39], %32 {strides = array<i32>} : memref<1x4x8x8xf32, #tpu.memory_space<vmem>>, vector<1x4x8x8xf32>,
    return
  }
  func.func @transform_0(%arg0: i32, %arg1: i32) -> (i32, i32, i32) {
    %c0_i32 = arith.constant 0 : i32
    %c0_i32_0 = arith.constant 0 : i32
    return %arg0, %arg1, %c0_i32 : i32, i32, i32
  }
  func.func @transform_1(%arg0: i32, %arg1: i32) -> (i32, i32, i32) {
    %c0_i32 = arith.constant 0 : i32
    %c0_i32_0 = arith.constant 0 : i32
    return %arg0, %arg1, %c0_i32 : i32, i32, i32
  }
  func.func @transform_2(%arg0: i32, %arg1: i32) -> (i32, i32, i32) {
    %c0_i32 = arith.constant 0 : i32
    %c0_i32_0 = arith.constant 0 : i32
    return %arg0, %arg1, %c0_i32 : i32, i32, i32
  }
  func.func @transform_3(%arg0: i32, %arg1: i32) -> (i32, i32, i32) {
    %c0_i32 = arith.constant 0 : i32
    %c0_i32_0 = arith.constant 0 : i32
    %c0_i32_1 = arith.constant 0 : i32
    %c0_i32_2 = arith.constant 0 : i32
    return %c0_i32, %c0_i32_0, %c0_i32_1 : i32, i32, i32
  }
  func.func @transform_4(%arg0: i32, %arg1: i32) -> (i32, i32, i32) {
    %c0_i32 = arith.constant 0 : i32
    %c0_i32_0 = arith.constant 0 : i32
    %c0_i32_1 = arith.constant 0 : i32
    %c0_i32_2 = arith.constant 0 : i32
    return %c0_i32, %c0_i32_0, %c0_i32_1 : i32, i32, i32
  }
  func.func @transform_5(%arg0: i32, %arg1: i32) -> (i32, i32, i32) {
    %c0_i32 = arith.constant 0 : i32
    %c0_i32_0 = arith.constant 0 : i32
    %c0_i32_1 = arith.constant 0 : i32
    %c0_i32_2 = arith.constant 0 : i32
    return %c0_i32, %c0_i32_0, %c0_i32_1 : i32, i32, i32
  }
  func.func @transform_6(%arg0: i32, %arg1: i32) -> (i32, i32, i32) {
    %c0_i32 = arith.constant 0 : i32
    %c0_i32_0 = arith.constant 0 : i32
    %c0_i32_1 = arith.constant 0 : i32
    %c0_i32_2 = arith.constant 0 : i32
    return %c0_i32, %c0_i32_0, %c0_i32_1 : i32, i32, i32
  }
  func.func @transform_7(%arg0: i32, %arg1: i32) -> (i32, i32, i32) {
    %c0_i32 = arith.constant 0 : i32
    %c0_i32_0 = arith.constant 0 : i32
    %c0_i32_1 = arith.constant 0 : i32
    %c0_i32_2 = arith.constant 0 : i32
    return %c0_i32, %c0_i32_0, %c0_i32_1 : i32, i32, i32
  }
  func.func @transform_8(%arg0: i32, %arg1: i32) -> (i32, i32, i32) {
    %c0_i32 = arith.constant 0 : i32
    %c0_i32_0 = arith.constant 0 : i32
    %c0_i32_1 = arith.constant 0 : i32
    %c0_i32_2 = arith.constant 0 : i32
    return %c0_i32, %c0_i32_0, %c0_i32_1 : i32, i32, i32
  }
  func.func @transform_9(%arg0: i32, %arg1: i32) -> (i32, i32, i32, i32) {
    %c0_i32 = arith.constant 0 : i32
    %c0_i32_0 = arith.constant 0 : i32
    %c0_i32_1 = arith.constant 0 : i32
    return %arg0, %c0_i32, %arg1, %c0_i32_0 : i32, i32, i32, i32
  }
  func.func @transform_10(%arg0: i32, %arg1: i32) -> (i32, i32, i32, i32) {
    %c0_i32 = arith.constant 0 : i32
    %c0_i32_0 = arith.constant 0 : i32
    %c0_i32_1 = arith.constant 0 : i32
    return %arg0, %c0_i32, %arg1, %c0_i32_0 : i32, i32, i32, i32
  }
  func.func @transform_11(%arg0: i32, %arg1: i32) -> (i32, i32, i32, i32) {
    %c0_i32 = arith.constant 0 : i32
    %c0_i32_0 = arith.constant 0 : i32
    %c0_i32_1 = arith.constant 0 : i32
    return %arg0, %c0_i32, %arg1, %c0_i32_0 : i32, i32, i32, i32
  }
}

</mosaic_0001>

<bundles_post_ra>
// kernel: tpu_custom_call.1
= control target key start
LH: loop header
LB: loop body
LE: loop exit
PB: predicated region body
PF: predicated region fallthrough
CT: control target
= control target key end

     0   :  { %s2464_s0 = inlined_call_operand.vmem [shape: f32[2,8,32], index: 0, kind: input, shape index: {}]   ;;  %s2465_s1 = inlined_call_operand.vmem [shape: f32[2,8,32], index: 1, kind: input, shape index: {}]   ;;  %s2466_s2 = inlined_call_operand.vmem [shape: f32[2,8,32], index: 2, kind: input, shape index: {}]   ;;  %s2467_s3 = inlined_call_operand.vmem [shape: f32[4,32,8], index: 3, kind: input, shape index: {}]   ;;  %s2468_s4 = inlined_call_operand.vmem [shape: f32[4,32,8], index: 4, kind: input, shape index: {}]   ;;  %s2469_s5 = inlined_call_operand.vmem [shape: f32[4,32,8], index: 5, kind: input, shape index: {}]   ;;  %s2470_s6 = inlined_call_operand.vmem [shape: f32[4,1,8], index: 6, kind: input, shape index: {}]   ;;  %s2471_s7 = inlined_call_operand.vmem [shape: f32[4,1,8], index: 7, kind: input, shape index: {}]   ;;  %s2472_s8 = inlined_call_operand.vmem [shape: f32[4,1,8], index: 8, kind: input, shape index: {}]   ;;  %s2473_s9 = inlined_call_operand.hbm [shape: f32[2,4,8,8], index: 9, kind: output, shape index: {0}]   ;;  %s2474_s10 = inlined_call_operand.hbm [shape: f32[2,4,8,8], index: 10, kind: output, shape index: {1}]   ;;  %s2475_s11 = inlined_call_operand.hbm [shape: f32[2,4,8,8], index: 11, kind: output, shape index: {2}]  }
   0x1   :  { %2484 = sst [smem:[#allocation10_spill]] %s2464_s0 }
   0x2   :  { %2485 = sst [smem:[#allocation11_spill]] %s2465_s1 }
   0x3   :  { %2486 = sst [smem:[#allocation12_spill]] %s2466_s2 }
   0x4   :  { %2487 = sst [smem:[#allocation13_spill]] %s2467_s3 }
   0x5   :  { %2488 = sst [smem:[#allocation14_spill]] %s2468_s4 }
   0x6   :  { %2489 = sst [smem:[#allocation15_spill]] %s2469_s5 }
   0x7   :  { %17 = vsyncpa [#allocation3], 0 }
   0x8   :  { %19 = vsyncpa [#allocation3 + $0x1], 0 }
   0x9   :  { %20 = vsyncpa [#allocation5], 0 }
   0xa   :  { %22 = vsyncpa [#allocation5 + $0x1], 0  ;;  %s2070_s17 = smov 0   ;;  %s2072_s18 = smov 0  }
   0xb   :  { %s2074_s19 = smov 0   ;;  %s2076_s20 = smov 0  }
   0xc   :  { %s2078_s21 = smov 0   ;;  %s2080_s22 = smov 0  }
   0xd LB: > { %s2477_s23 = sadd.s32 4294967295, %s2006_s22   ;;  %s2476_s24 = sadd.s32 4294967294, %s2006_s22   ;;  %s2006_s22 = sphi %s2080_s22, %s28_s22   ;;  %s2002_s21 = sphi %s2078_s21, %s2509_s21   ;;  %s1998_s20 = sphi %s2076_s20, %s2508_s20   ;;  %s1994_s19 = sphi %s2074_s19, %s2507_s19   ;;  %s1990_s18 = sphi %s2072_s18, %s2506_s18   ;;  %s1986_s17 = sphi %s2070_s17, %s2505_s17  }
   0xe   : > { %s40_s25 = sadd.s32 1, %s2002_s21  ;;  %s259_s26 = sadd.s32 1, %s1994_s19 }
   0xf   : > { %p42_p0 = scmp.ge.s32.totalorder %s40_s25, 2  ;;  %p269_p1 = scmp.ne.s32.totalorder %s1994_s19, %s1990_s18 }
  0x10   : > { %p270_p2 = scmp.eq.s32.totalorder %s2477_s23, 1  ;;  %p275_p3 = scmp.ne.s32.totalorder %s1990_s18, %s1986_s17 }
  0x11   : > { %s2511_s25 = smov (%p42_p0, %s40_s25), 0  ;;  %p276_p5 = scmp.eq.s32.totalorder %s2476_s24, 1 }
  0x12   : > { %2490 = sst [smem:[#allocation9_spill]] %s2511_s25  ;;  %p2112_p4 = por %p270_p2, %p269_p1 }
  0x13   : > { %s254_s28 = ssub.s32 %s2002_s21, %s2511_s25  ;;  %p1749_p6 = scmp.ge.s32.totalorder %s2006_s22, 1 }
  0x14   : > { %p257_p7 = scmp.eq.s32.totalorder %s254_s28, 0  ;;  %p2121_p8 = por %p276_p5, %p275_p3 }
  0x15   : > { %p398_p9 = scmp.lt.s32.totalorder %s2006_s22, 3 }
  0x16   : > { %s2127_s30 = scalar_select %p257_p7, %s1994_s19, %s259_s26  }
  0x17   : > { %p399_p10 = pnand %p1749_p6, %p398_p9 }
  0x18   : > { %s2493_s5 = sld [smem:[#allocation15_spill]] (!%p399_p10)  ;;  %p464_p11 = scmp.lt.s32.totalorder (!%p399_p10), %s1998_s20, 1 }
  0x19   : > { %402 = sbr.rel (%p399_p10) target bundleno = 602 (0x25a), region = 56  ;;  %s2494_s3 = sld [smem:[#allocation13_spill]] (!%p399_p10) }
  0x1a   : > { %s2495_s4 = sld [smem:[#allocation14_spill]] (!%p399_p10)  ;;  %s2335_s13 = sshll.u32 (!%p399_p10), %s1998_s20, 5 }
  0x1b   : > { %s2496_s0 = sld [smem:[#allocation10_spill]] (!%p399_p10)  ;;  %s2499_s14 = sand.u32 (!%p399_p10), 1, %s1990_s18  }
  0x1c   : > { %s2497_s1 = sld [smem:[#allocation11_spill]] (!%p399_p10)  ;;  %s1511_s15 = scalar_lea.sflag (!%p399_p10), [#allocation3], %s2499_s14 }
  0x1d   : > { %s2498_s2 = sld [smem:[#allocation12_spill]] (!%p399_p10) }
  0x1e   : > { %v1174_v0 = vld [vmem:[%s2493_s5 + $0x20] sm:$0xff]  ;;  %v1175_v3 = vld [vmem:[%s2493_s5 + $0x28] sm:$0xff]  ;;  %v1176_v6 = vld [vmem:[%s2493_s5 + $0x30] sm:$0xff]  ;;  %s465_s24 = scalar_select %p464_p11, %s1998_s20, 1  ;;  %vm630_vm0 = vcmask 261120   ;;  %vm823_vm1 = vcmask 64512  }
  0x1f   : > { %v490_v1 = vld [vmem:[%s2494_s3 + $0x20] sm:$0xff]  ;;  %1218 = vxpose.xlu1.b32.start [1/4] (short) (narrow) %v1174_v0, 8  ;;  %v491_v4 = vld [vmem:[%s2494_s3 + $0x28] sm:$0xff]  ;;  %v492_v7 = vld [vmem:[%s2494_s3 + $0x30] sm:$0xff] }
  0x20   : > { %534 = vxpose.xlu0.b32.start [1/4] (short) (narrow) %v490_v1, 8  ;;  %v833_v2 = vld [vmem:[%s2495_s4 + $0x20] sm:$0xff]  ;;  %v834_v5 = vld [vmem:[%s2495_s4 + $0x28] sm:$0xff]  ;;  %v835_v8 = vld [vmem:[%s2495_s4 + $0x30] sm:$0xff]  ;;  %s1753_s26 = sshll.u32 %s465_s24, 3 }
  0x21   : > { %877 = vxpose.xlu2.b32.start [1/4] (short) (narrow) %v833_v2, 8  ;;  %v1177_v9 = vld [vmem:[%s2493_s5 + $0x38] sm:$0xff]  ;;  %v494_v12 = vld [vmem:[%s2494_s3 + $0x40] sm:$0xff]  ;;  %v495_v15 = vld [vmem:[%s2494_s3 + $0x48] sm:$0xff] }
  0x22   : > { %v493_v10 = vld [vmem:[%s2494_s3 + $0x38] sm:$0xff]  ;;  %v486_v13 = vld [vmem:[%s2494_s3] sm:$0xff]  ;;  %v487_v16 = vld [vmem:[%s2494_s3 + $0x8] sm:$0xff] }
  0x23   : > { %v836_v11 = vld [vmem:[%s2495_s4 + $0x38] sm:$0xff]  ;;  %v1178_v14 = vld [vmem:[%s2493_s5 + $0x40] sm:$0xff]  ;;  %v1179_v17 = vld [vmem:[%s2493_s5 + $0x48] sm:$0xff] }
  0x24   : > { %v496_v18 = vld [vmem:[%s2494_s3 + $0x50] sm:$0xff]  ;;  %v497_v21 = vld [vmem:[%s2494_s3 + $0x58] sm:$0xff]  ;;  %v829_v24 = vld [vmem:[%s2495_s4] sm:$0xff] }
  0x25   : > { %v488_v19 = vld [vmem:[%s2494_s3 + $0x10] sm:$0xff]  ;;  %v489_v22 = vld [vmem:[%s2494_s3 + $0x18] sm:$0xff]  ;;  %v837_v25 = vld [vmem:[%s2495_s4 + $0x40] sm:$0xff] }
  0x26   : > { %v1180_v20 = vld [vmem:[%s2493_s5 + $0x50] sm:$0xff]  ;;  %v1181_v23 = vld [vmem:[%s2493_s5 + $0x58] sm:$0xff]  ;;  %v498_v26 = vld [vmem:[%s2494_s3 + $0x60] sm:$0xff] }
  0x27   : > { %1219 = vxpose.xlu1.b32.cont [2/4] (short) (narrow) %v1175_v3, 8  ;;  %v830_v27 = vld [vmem:[%s2495_s4 + $0x8] sm:$0xff]  ;;  %v831_v30 = vld [vmem:[%s2495_s4 + $0x10] sm:$0xff]  ;;  %v832_v33 = vld [vmem:[%s2495_s4 + $0x18] sm:$0xff] }
  0x28   : > { %535 = vxpose.xlu0.b32.cont [2/4] (short) (narrow) %v491_v4, 8  ;;  %v838_v28 = vld [vmem:[%s2495_s4 + $0x48] sm:$0xff]  ;;  %v839_v31 = vld [vmem:[%s2495_s4 + $0x50] sm:$0xff]  ;;  %v840_v34 = vld [vmem:[%s2495_s4 + $0x58] sm:$0xff] }
  0x29   : > { %878 = vxpose.xlu2.b32.cont [2/4] (short) (narrow) %v834_v5, 8  ;;  %v499_v29 = vld [vmem:[%s2494_s3 + $0x68] sm:$0xff]  ;;  %v500_v32 = vld [vmem:[%s2494_s3 + $0x70] sm:$0xff]  ;;  %v501_v35 = vld [vmem:[%s2494_s3 + $0x78] sm:$0xff]  ;;  %s470_s3 = scalar_lea.vmem %s2496_s0, %s1753_s26 }
  0x2a   : > { %v841_v36 = vld [vmem:[%s2495_s4 + $0x60] sm:$0xff]  ;;  %v842_v39 = vld [vmem:[%s2495_s4 + $0x68] sm:$0xff]  ;;  %v843_v42 = vld [vmem:[%s2495_s4 + $0x70] sm:$0xff] }
  0x2b   : > { %v1182_v37 = vld [vmem:[%s2493_s5 + $0x60] sm:$0xff]  ;;  %v1183_v40 = vld [vmem:[%s2493_s5 + $0x68] sm:$0xff]  ;;  %v1184_v43 = vld [vmem:[%s2493_s5 + $0x70] sm:$0xff] }
  0x2c   : > { %v1170_v38 = vld [vmem:[%s2493_s5] sm:$0xff]  ;;  %v1171_v41 = vld [vmem:[%s2493_s5 + $0x8] sm:$0xff]  ;;  %v1172_v44 = vld [vmem:[%s2493_s5 + $0x10] sm:$0xff] }
  0x2d   : > { %v844_v45 = vld [vmem:[%s2495_s4 + $0x78] sm:$0xff]  ;;  %s477_s4 = scalar_lea.vmem %s2497_s1, %s1753_s26  ;;  %v485_v48 = vld [vmem:[%s470_s3] sm:$0xff]  ;;  %s484_s3 = scalar_lea.vmem %s2498_s2, %s1753_s26 }
  0x2e   : > { %v1185_v46 = vld [vmem:[%s2493_s5 + $0x78] sm:$0xff]  ;;  %1785 = vmatpush.xpose.msk.msra.mxu3 %vm630_vm0, %v485_v48  ;;  %1756 = vmatpush.xpose.msk.msra.mxu0 %vm630_vm0, %v485_v48  ;;  %v828_v49 = vld [vmem:[%s477_s4] sm:$0xff]  ;;  %s2479_s4 = sand.u32 1, %s1990_s18  }
  0x2f   : > { %1220 = vxpose.xlu1.b32.cont [3/4] (short) (narrow) %v1176_v6, 8  ;;  %v1173_v47 = vld [vmem:[%s2493_s5 + $0x18] sm:$0xff]  ;;  %1786 = vmatpush.xpose.msk.msra.mxu1 %vm630_vm0, %v828_v49  ;;  %v1169_v55 = vld [vmem:[%s484_s3] sm:$0xff]  ;;  %s2308_s24 = sshll.u32 %s2479_s4, 5  ;;  %s1533_s3 = scalar_lea.hbm %s2473_s9, %s2335_s13 }
  0x30   : > { %536 = vxpose.xlu0.b32.cont [3/4] (short) (narrow) %v492_v7, 8  ;;  %1787 = vmatpush.xpose.msk.msra.mxu2 %vm630_vm0, %v1169_v55  ;;  %s2311_s26 = scalar_lea.vmem [#allocation4], %s2308_s24  ;;  %s449_s12 = scalar_lea.vmem [#allocation2], %s2308_s24 }
  0x31   : > { %879 = vxpose.xlu2.b32.cont [3/4] (short) (narrow) %v835_v8, 8  ;;  %s1534_s16 = sshll.u32 %s449_s12, 4  ;;  %s2348_s20 = sshll.u32 %s1533_s3, 4  ;;  %s1535_s16 = int_to_ptr.vmem [resolvable:$true] %s1534_s16  ;;  %s1537_s20 = int_to_ptr.hbm [resolvable:$true] %s2348_s20 }
  0x32   : > { %1761 = vmatpush.xpose.msk.msrb.mxu0 %vm630_vm0, %v828_v49  ;;  %s1882_s28 = sshra.s32 %s1537_s20, 4  ;;  %s1888_s4 = scalar_lea.hbm %s2473_s9, 64  ;;  %s1883_s28 = int_to_ptr.hbm [resolvable:$true] %s1882_s28 }
  0x33   : > { %s1884_s23 = scalar_lea.hbm %s1883_s28, 32  ;;  %p1889_p1 = scmp.lt.s32.totalorder %s1883_s28, %s2473_s9 }
  0x34   : > { %p1885_p12 = scmp.ne.s32.totalorder %s1883_s28, %s1884_s23  ;;  %p1890_p2 = scmp.lt.s32.totalorder %s1888_s4, %s1884_s23 }
  0x36   : > { %p1886_p13 = pnand %p1885_p12, %p2112_p4  ;;  %p1891_p3 = por %p1890_p2, %p1889_p1 }
  0x37   : > { %1221 = vxpose.xlu1.b32.end [4/4] (short) (narrow) %v1177_v9, 8 }
  0x38   : > { %537 = vxpose.xlu0.b32.end [4/4] (short) (narrow) %v493_v10, 8  ;;  %p1887_p0 = pneg %p1886_p13 }
  0x39   : > { %880 = vxpose.xlu2.b32.end [4/4] (short) (narrow) %v836_v11, 8  ;;  %v1856_v11 = vld [vmem:[%s2471_s7 + $0x1] ss:$0 sm:$0xff] }
  0x3a   : > { %p1892_p5 = pnand %p1891_p3, %p1887_p0 }
  0x3f   : > { %566 = vxpose.xlu1.b32.start [1/4] (short) (narrow) %v494_v12, 8 }
  0x40   : > { %502 = vxpose.xlu0.b32.start [1/4] (short) (narrow) %v486_v13, 8 }
  0x41   : > { %1250 = vxpose.xlu2.b32.start [1/4] (short) (narrow) %v1178_v14, 8  ;;  %v1857_v14 = vld [vmem:[%s2470_s6 + $0x1] ss:$0 sm:$0xff] }
  0x47   : > { %567 = vxpose.xlu1.b32.cont [2/4] (short) (narrow) %v495_v15, 8 }
  0x48   : > { %503 = vxpose.xlu0.b32.cont [2/4] (short) (narrow) %v487_v16, 8 }
  0x49   : > { %1251 = vxpose.xlu2.b32.cont [2/4] (short) (narrow) %v1179_v17, 8  ;;  %v1859_v17 = vld [vmem:[%s2470_s6 + $0x2] ss:$0 sm:$0xff] }
  0x4f   : > { %568 = vxpose.xlu1.b32.cont [3/4] (short) (narrow) %v496_v18, 8 }
  0x50   : > { %504 = vxpose.xlu0.b32.cont [3/4] (short) (narrow) %v488_v19, 8 }
  0x51   : > { %1252 = vxpose.xlu2.b32.cont [3/4] (short) (narrow) %v1180_v20, 8  ;;  %v1858_v20 = vld [vmem:[%s2470_s6] ss:$0 sm:$0xff] }
  0x57   : > { %569 = vxpose.xlu1.b32.end [4/4] (short) (narrow) %v497_v21, 8 }
  0x58   : > { %505 = vxpose.xlu0.b32.end [4/4] (short) (narrow) %v489_v22, 8 }
  0x59   : > { %1253 = vxpose.xlu2.b32.end [4/4] (short) (narrow) %v1181_v23, 8  ;;  %v1860_v23 = vld [vmem:[%s2471_s7 + $0x2] ss:$0 sm:$0xff] }
  0x5f   : > { %845 = vxpose.xlu1.b32.start [1/4] (short) (narrow) %v829_v24, 8  ;;  %v1861_v24 = vld [vmem:[%s2471_s7] ss:$0 sm:$0xff] }
  0x60   : > { %909 = vxpose.xlu0.b32.start [1/4] (short) (narrow) %v837_v25, 8 }
  0x61   : > { %598 = vxpose.xlu2.b32.start [1/4] (short) (narrow) %v498_v26, 8 }
  0x67   : > { %846 = vxpose.xlu1.b32.cont [2/4] (short) (narrow) %v830_v27, 8 }
  0x68   : > { %910 = vxpose.xlu0.b32.cont [2/4] (short) (narrow) %v838_v28, 8 }
  0x69   : > { %599 = vxpose.xlu2.b32.cont [2/4] (short) (narrow) %v499_v29, 8  ;;  %v1862_v29 = vld [vmem:[%s2470_s6 + $0x3] ss:$0 sm:$0xff] }
  0x6f   : > { %847 = vxpose.xlu1.b32.cont [3/4] (short) (narrow) %v831_v30, 8 }
  0x70   : > { %911 = vxpose.xlu0.b32.cont [3/4] (short) (narrow) %v839_v31, 8  ;;  %v1864_v31 = vld [vmem:[%s2472_s8] ss:$0 sm:$0xff] }
  0x71   : > { %600 = vxpose.xlu2.b32.cont [3/4] (short) (narrow) %v500_v32, 8 }
  0x77   : > { %848 = vxpose.xlu1.b32.end [4/4] (short) (narrow) %v832_v33, 8 }
  0x78   : > { %912 = vxpose.xlu0.b32.end [4/4] (short) (narrow) %v840_v34, 8 }
  0x79   : > { %601 = vxpose.xlu2.b32.end [4/4] (short) (narrow) %v501_v35, 8 }
  0x7f   : > { %941 = vxpose.xlu1.b32.start [1/4] (short) (narrow) %v841_v36, 8 }
  0x80   : > { %1282 = vxpose.xlu0.b32.start [1/4] (short) (narrow) %v1182_v37, 8 }
  0x81   : > { %1186 = vxpose.xlu2.b32.start [1/4] (short) (narrow) %v1170_v38, 8 }
  0x87   : > { %942 = vxpose.xlu1.b32.cont [2/4] (short) (narrow) %v842_v39, 8 }
  0x88   : > { %1283 = vxpose.xlu0.b32.cont [2/4] (short) (narrow) %v1183_v40, 8 }
  0x89   : > { %1187 = vxpose.xlu2.b32.cont [2/4] (short) (narrow) %v1171_v41, 8 }
  0x8f   : > { %943 = vxpose.xlu1.b32.cont [3/4] (short) (narrow) %v843_v42, 8 }
  0x90   : > { %1284 = vxpose.xlu0.b32.cont [3/4] (short) (narrow) %v1184_v43, 8 }
  0x91   : > { %1188 = vxpose.xlu2.b32.cont [3/4] (short) (narrow) %v1172_v44, 8 }
  0x97   : > { %944 = vxpose.xlu1.b32.end [4/4] (short) (narrow) %v844_v45, 8 }
  0x98   : > { %1285 = vxpose.xlu0.b32.end [4/4] (short) (narrow) %v1185_v46, 8 }
  0x99   : > { %1189 = vxpose.xlu2.b32.end [4/4] (short) (narrow) %v1173_v47, 8 }
  0xba   : > { %v893_v50 = vpop.trf.xlu2 }
  0xbb   : > { %1763 = vmatmul.msk.f32.vlgmr.msra.gmra.mxu1 %vm630_vm0, %v893_v50 }
  0xc3   : > { %v1234_v52 = vpop.trf.xlu1 }
  0xc4   : > { %v550_v51 = vpop.trf.xlu0  ;;  %1768 = vmatmul.msk.f32.vlgmr.msra.gmra.mxu2 %vm630_vm0, %v1234_v52 }
  0xc5   : > { %1758 = vmatmul.msk.f32.vlgmr.msra.gmra.mxu3 %vm630_vm0, %v550_v51 }
  0xda   : > { %v1266_v56 = vpop.trf.xlu2 }
  0xdb   : > { %1769 = vmatmul.msk.f32.gmra.mxu2 %vm630_vm0, %v1266_v56 }
  0xe3   : > { %v582_v54 = vpop.trf.xlu1 }
  0xe4   : > { %v518_v53 = vpop.trf.xlu0  ;;  %1759 = vmatmul.msk.f32.gmra.mxu3 %vm630_vm0, %v582_v54 }
  0xe5   : > { %1757 = vmatmul.msk.f32.vlgmr.msra.gmra.mxu0 %vm630_vm0, %v518_v53 }
  0xe6   : > { %1766 = vmatpush.xpose.msk.msra.mxu0 %vm630_vm0, %v1169_v55 }
  0xfa   : > { %v614_v57 = vpop.trf.xlu2 }
  0xfb   : > { %1760 = vmatmul.msk.f32.gmra.mxu3 %vm630_vm0, %v614_v57 }
 0x103   : > { %v861_v59 = vpop.trf.xlu1 }
 0x104   : > { %v925_v58 = vpop.trf.xlu0  ;;  %1762 = vmatmul.msk.f32.vlgmr.msrb.gmra.mxu0 %vm630_vm0, %v861_v59 }
 0x105   : > { %1764 = vmatmul.msk.f32.gmra.mxu1 %vm630_vm0, %v925_v58 }
 0x11a   : > { %v1202_v60 = vpop.trf.xlu2 }
 0x11b   : > { %1767 = vmatmul.msk.f32.vlgmr.msra.gmra.mxu0 %vm630_vm0, %v1202_v60 }
 0x123   : > { %v957_v61 = vpop.trf.xlu1 }
 0x124   : > { %v1298_v62 = vpop.trf.xlu0  ;;  %1765 = vmatmul.msk.f32.gmra.mxu1 %vm630_vm0, %v957_v61 }
 0x125   : > { %1770 = vmatmul.msk.f32.gmra.mxu2 %vm630_vm0, %v1298_v62 }
 0x138   : > { %v1008_v63 = vpop.f32.mrf.mxu1 }
 0x139   : > { %1049 = vxpose.xlu2.b32.start.end [1/1] (short) (narrow) %v1008_v63, 8 }
 0x147   : > { %v1349_v6 = vpop.f32.mrf.mxu2 }
 0x148   : > { %v666_v0 = vpop.f32.mrf.mxu3 }
 0x149   : > { %707 = vxpose.xlu1.b32.start.end [1/1] (short) (narrow) %v666_v0, 8 }
 0x15e   : > { %v1352_v8 = vpop.f32.mrf.mxu2 }
 0x162   : > { %v663_v1 = vpop.f32.mrf.mxu0 }
 0x163   : > { %675 = vxpose.xlu0.b32.start.end [1/1] (short) (narrow) %v663_v1, 8 }
 0x167   : > { %v669_v2 = vpop.f32.mrf.mxu3 }
 0x168   : > { %739 = vxpose.xlu2.b32.start.end [1/1] (short) (narrow) %v669_v2, 8 }
 0x17e   : > { %v672_v5 = vpop.f32.mrf.mxu3 }
 0x181   : > { %v1005_v4 = vpop.f32.mrf.mxu0 }
 0x182   : > { %v1011_v3 = vpop.f32.mrf.mxu1  ;;  %1017 = vxpose.xlu1.b32.start.end [1/1] (short) (narrow) %v1005_v4, 8 }
 0x183   : > { %1081 = vxpose.xlu0.b32.start.end [1/1] (short) (narrow) %v1011_v3, 8 }
 0x18b   : > { %771 = vxpose.xlu0.b32.start.end [1/1] (short) (narrow) %v672_v5, 8 }
 0x193   : > { %1390 = vxpose.xlu0.b32.start.end [1/1] (short) (narrow) %v1349_v6, 8 }
 0x198   : > { %v1346_v7 = vpop.f32.mrf.mxu0 }
 0x199   : > { %1358 = vxpose.xlu2.b32.start.end [1/1] (short) (narrow) %v1346_v7, 8 }
 0x1a1   : > { %v1014_v9 = vpop.f32.mrf.mxu1 }
 0x1a2   : > { %1113 = vxpose.xlu1.b32.start.end [1/1] (short) (narrow) %v1014_v9, 8 }
 0x1a8   : > { %v1355_v10 = vpop.f32.mrf.mxu2 }
 0x1a9   : > { %1454 = vxpose.xlu2.b32.start.end [1/1] (short) (narrow) %v1355_v10, 8 }
 0x1aa   : > { %1422 = vxpose.xlu1.b32.start.end [1/1] (short) (narrow) %v1352_v8, 8 }
 0x1d2   : > { %v1065_v12 = vpop.trf.xlu2 }
 0x1d3   : > { %v1162_v13 = vadd.f32 %v1856_v11, %v1065_v12 }
 0x1d5   : > { %1166 = vst.msk [vmem:[%s2311_s26 + $0x8] sm:$0xff] %vm823_vm1, %v1162_v13 }
 0x1ed   : > { %v723_v15 = vpop.trf.xlu1 }
 0x1ee   : > { %v820_v16 = vadd.f32 %v1857_v14, %v723_v15 }
 0x1f0   : > { %825 = vst.msk [vmem:[%s449_s12 + $0x8] sm:$0xff] %vm823_vm1, %v820_v16 }
 0x201   : > { %v755_v18 = vpop.trf.xlu2 }
 0x202   : > { %v821_v19 = vadd.f32 %v1859_v17, %v755_v18 }
 0x204   : > { %826 = vst.msk [vmem:[%s449_s12 + $0x10] sm:$0xff] %vm823_vm1, %v821_v19 }
 0x207   : > { %v691_v21 = vpop.trf.xlu0 }
 0x208   : > { %v819_v22 = vadd.f32 %v1858_v20, %v691_v21 }
 0x20a   : > { %824 = vst.msk [vmem:[%s449_s12] sm:$0xff] %vm823_vm1, %v819_v22 }
 0x226   : > { %v1033_v26 = vpop.trf.xlu1 }
 0x227   : > { %v1097_v25 = vpop.trf.xlu0  ;;  %v1161_v28 = vadd.f32 %v1861_v24, %v1033_v26 }
 0x228   : > { %v1163_v27 = vadd.f32 %v1860_v23, %v1097_v25 }
 0x229   : > { %1165 = vst.msk [vmem:[%s2311_s26] sm:$0xff] %vm823_vm1, %v1161_v28 }
 0x22a   : > { %1167 = vst.msk [vmem:[%s2311_s26 + $0x10] sm:$0xff] %vm823_vm1, %v1163_v27 }
 0x22f   : > { %v787_v30 = vpop.trf.xlu0 }
 0x230   : > { %v822_v32 = vadd.f32 %v1862_v29, %v787_v30 }
 0x232   : > { %827 = vst.msk [vmem:[%s449_s12 + $0x18] sm:$0xff] %vm823_vm1, %v822_v32  ;;  %v1374_v33 = vpop.trf.xlu2 }
 0x233   : > { %v1502_v34 = vadd.f32 %v1864_v31, %v1374_v33 }
 0x234   : > { %1895 = shalt.err (!%p1892_p5)
}
 0x235   : > { %s2480_s12 = smov 128   ;;  %s2482_s14 = smov 8   ;;  %v1865_v35 = vld [vmem:[%s2472_s8 + $0x1] ss:$0 sm:$0xff]  ;;  %v1867_v38 = vld [vmem:[%s2472_s8 + $0x3] ss:$0 sm:$0xff] }
 0x236   : > { %1788 = dma.vmem_to_hbm [thread:$0]  (%p2112_p4), %s1535_s16, 512, %s1537_s20, %s1511_s15, %s2480_s12, %s2480_s12, %s2482_s14  }
 0x237   : > { %s2374_s1 = scalar_lea.vmem [#allocation6], %s2308_s24  ;;  %v1406_v36 = vpop.trf.xlu0  ;;  %s1551_s24 = scalar_lea.hbm %s2474_s10, %s2335_s13  ;;  %v1863_v41 = vld [vmem:[%s2471_s7 + $0x3] ss:$0 sm:$0xff] }
 0x238   : > { %1506 = vst.msk [vmem:[%s2374_s1] sm:$0xff] %vm823_vm1, %v1502_v34  ;;  %v1503_v37 = vadd.f32 %v1865_v35, %v1406_v36  ;;  %s1552_s15 = sshll.u32 %s2311_s26, 4  ;;  %s2500_s0 = sadd.s32 4294967295, %s2006_s22   ;;  %s1553_s15 = int_to_ptr.vmem [resolvable:$true] %s1552_s15 }
 0x239   : > { %s2395_s3 = sand.u32 1, %s2500_s0   ;;  %s1554_s28 = sshll.u32 %s1551_s24, 4  ;;  %s1555_s28 = int_to_ptr.hbm [resolvable:$true] %s1554_s28 }
 0x23a   : > { %1507 = vst.msk [vmem:[%s2374_s1 + $0x8] sm:$0xff] %vm823_vm1, %v1503_v37  ;;  %s1569_s20 = scalar_lea.hbm %s2475_s11, %s2335_s13  ;;  %s1516_s4 = scalar_lea.sflag [#allocation5], %s2395_s3 }
 0x23b   : > { %s1910_s25 = sshra.s32 %s1555_s28, 4  ;;  %s1916_s14 = scalar_lea.hbm %s2474_s10, 64  ;;  %s1911_s25 = int_to_ptr.hbm [resolvable:$true] %s1910_s25 }
 0x23c   : > { %s1912_s12 = scalar_lea.hbm %s1911_s25, 32  ;;  %p1917_p10 = scmp.lt.s32.totalorder %s1911_s25, %s2474_s10 }
 0x23d   : > { %p1913_p6 = scmp.ne.s32.totalorder %s1911_s25, %s1912_s12  ;;  %p1918_p11 = scmp.lt.s32.totalorder %s1916_s14, %s1912_s12 }
 0x23f   : > { %p1914_p7 = pnand %p1913_p6, %p2112_p4  ;;  %p1919_p12 = por %p1918_p11, %p1917_p10 }
 0x241   : > { %p1915_p9 = pneg %p1914_p7 }
 0x242   : > { %v1470_v39 = vpop.trf.xlu2 }
 0x243   : > { %v1505_v40 = vadd.f32 %v1867_v38, %v1470_v39  ;;  %p1920_p13 = pnand %p1919_p12, %p1915_p9 }
 0x245   : > { %1509 = vst.msk [vmem:[%s2374_s1 + $0x18] sm:$0xff] %vm823_vm1, %v1505_v40 }
 0x246   : > { %v1129_v42 = vpop.trf.xlu1 }
 0x247   : > { %v1164_v43 = vadd.f32 %v1863_v41, %v1129_v42 }
 0x249   : > { %1168 = vst.msk [vmem:[%s2311_s26 + $0x18] sm:$0xff] %vm823_vm1, %v1164_v43 }
 0x24a   : > { %1923 = shalt.err (!%p1920_p13)
}
 0x24b   : > { %s2501_s26 = smov 8   ;;  %s2502_s13 = smov 128   ;;  %v1866_v44 = vld [vmem:[%s2472_s8 + $0x2] ss:$0 sm:$0xff] }
 0x24c   : > { %1789 = dma.vmem_to_hbm [thread:$0]  (%p2112_p4), %s1553_s15, 512, %s1555_s28, %s1516_s4, %s2502_s13, %s2502_s13, %s2501_s26  }
 0x24d   : > { %s1570_s2 = sshll.u32 %s2374_s1, 4  ;;  %s1572_s5 = sshll.u32 %s1569_s20, 4  ;;  %s1571_s2 = int_to_ptr.vmem [resolvable:$true] %s1570_s2  ;;  %s1573_s5 = int_to_ptr.hbm [resolvable:$true] %s1572_s5 }
 0x24e   : > { %v1438_v45 = vpop.trf.xlu1  ;;  %s1938_s12 = sshra.s32 %s1573_s5, 4  ;;  %s1944_s25 = scalar_lea.hbm %s2475_s11, 64  ;;  %s1939_s12 = int_to_ptr.hbm [resolvable:$true] %s1938_s12 }
 0x24f   : > { %v1504_v46 = vadd.f32 %v1866_v44, %v1438_v45  ;;  %s1940_s14 = scalar_lea.hbm %s1939_s12, 32  ;;  %p1945_p3 = scmp.lt.s32.totalorder %s1939_s12, %s2475_s11 }
 0x250   : > { %p1941_p0 = scmp.ne.s32.totalorder %s1939_s12, %s1940_s14  ;;  %p1946_p5 = scmp.lt.s32.totalorder %s1944_s25, %s1940_s14 }
 0x251   : > { %1508 = vst.msk [vmem:[%s2374_s1 + $0x10] sm:$0xff] %vm823_vm1, %v1504_v46 }
 0x252   : > { %p1942_p1 = pnand %p1941_p0, %p2112_p4  ;;  %p1947_p6 = por %p1946_p5, %p1945_p3 }
 0x254   : > { %p1943_p2 = pneg %p1942_p1 }
 0x256   : > { %p1948_p7 = pnand %p1947_p6, %p1943_p2 }
 0x258   : > { %1951 = shalt.err (!%p1948_p7)
}
 0x259   : > { %1790 = dma.vmem_to_hbm [thread:$0]  (%p2112_p4), %s1571_s2, 512, %s1573_s5, %s1516_s4, %s2502_s13, %s2502_s13, %s2501_s26  }
 0x25a PF: > { %p1804_p9 = scmp.ge.s32.totalorder %s2006_s22, 2  ;;  %s1587_s1 = sand.u32 1, %s1986_s17  }
 0x25b   : > { %s1588_s20 = scalar_lea.sflag [#allocation3], %s1587_s1 }
 0x25c   : > { %p1795_p10 = pnand %p1804_p9, %p2121_p8 }
 0x25e   : > { %p1796_p11 = pneg %p1795_p10 }
 0x260   : > { %1977 = dma.done.wait (%p1796_p11), %s1588_s20, 512  }
 0x261   : > { %1979 = vsyncadd (%p1796_p11), %s1588_s20, 4294966784  ;;  %s2503_s27 = sadd.s32 4294967294, %s2006_s22  }
 0x262   : > { %s1597_s23 = sand.u32 1, %s2503_s27  }
 0x263   : > { %s1598_s16 = scalar_lea.sflag [#allocation5], %s1597_s23 }
 0x264   : > { %1981 = dma.done.wait (%p1796_p11), %s1598_s16, 1024  }
 0x265   : > { %1983 = vsyncadd (%p1796_p11), %s1598_s16, 4294966272  ;;  %s28_s22 = sadd.s32 1, %s2006_s22   ;;  %s2504_s3 = sld [smem:[#allocation9_spill]] }
 0x266   : > { %p25_p4 = scmp.ge.s32.totalorder %s28_s22, 4   ;;  %s2505_s17 = smov %s1990_s18 }
 0x267   : > { %s2506_s18 = smov %s1994_s19  ;;  %s2507_s19 = smov %s2127_s30 }
 0x268   : > { %s2508_s20 = smov %s2002_s21  ;;  %27 = sbr.rel (!%p25_p4) target bundleno = 13 (0xd), region = 129 }
 0x26b   : > { %s2509_s21 = smov %s2504_s3 }
 0x26d   :  { %1614 = vsyncpa [#allocation3], 1 }
 0x26e   :  { %1616 = vsyncpa [#allocation3 + $0x1], 1 }
 0x26f   :  { %1617 = vsyncpa [#allocation5], 1 }
 0x270   :  { %1619 = vsyncpa [#allocation5 + $0x1], 1 }

</bundles_post_ra>
